<compile_context>
chip_gen: v7x
topology: tpu7x:2x2x1
jax: 0.10.0
libtpu: 0.0.40
codegen_flags: <defaults>
</compile_context>

<pallas_src>
import math

import jax
import jax.numpy as jnp
from jax.experimental import pallas as pl
from jax.experimental.pallas import tpu as pltpu


def _round_up(n, m):
    return ((n + m - 1) // m) * m


def mlp_kernel(x_ref, w1_ref, b1_ref, w2_ref, b2_ref, w3_ref, b3_ref, o_ref):
    # layer1: bf16 MXU matmul, f32 accumulate, bias + ReLU
    h1 = jnp.dot(x_ref[...], w1_ref[...], preferred_element_type=jnp.float32)
    h1 = jnp.maximum(h1 + b1_ref[...], 0.0)
    # layer2: bias + ReLU (activation cast back to bf16 for the MXU)
    h2 = jnp.dot(h1.astype(w2_ref.dtype), w2_ref[...],
                 preferred_element_type=jnp.float32)
    h2 = jnp.maximum(h2 + b2_ref[...], 0.0)
    # output layer (H2p -> 1) expressed as (1, H2p) @ h2.T so the result is already a
    # lane-dense (1, block_b) row (unmasked stores, no narrow writeback DMA).
    z = jnp.dot(w3_ref[...], h2.T, preferred_element_type=jnp.float32)
    o_ref[...] = jax.nn.sigmoid(z + b3_ref[0, 0])   # b3 scalar read from SMEM


def prepare_params(params, compute_dtype=jnp.bfloat16):
    """One-time preprocessing (outside the hot path): pad hidden dims to lane-aligned
    multiples of 128 (zeros propagate exactly through bias+ReLU and the zero-padded
    w3 row), cast matmul weights to bf16, and lay w3 out as a (1, H2p) row."""
    w1, b1, w2, b2, w3, b3 = params
    H1, H2 = w1.shape[1], w2.shape[1]
    H1p, H2p = _round_up(H1, 128), _round_up(H2, 128)

    w1p = jnp.pad(w1, ((0, 0), (0, H1p - H1))).astype(compute_dtype)
    b1p = jnp.pad(b1, ((0, 0), (0, H1p - H1))).astype(jnp.float32)
    w2p = jnp.pad(w2, ((0, H1p - H1), (0, H2p - H2))).astype(compute_dtype)
    b2p = jnp.pad(b2, ((0, 0), (0, H2p - H2))).astype(jnp.float32)
    w3_row = jnp.pad(w3, ((0, H2p - H2), (0, 0))).astype(jnp.float32).T   # (1, H2p)
    b3p = jnp.reshape(b3, (1, 1)).astype(jnp.float32)
    return (w1p, b1p, w2p, b2p, w3_row, b3p)


def torch_nn_forward(x, prepared_params, *, block_b=None):
    """Forward pass of torch_NN as a single Pallas kernel, tiled/pipelined over batch.

    `prepared_params` must come from prepare_params()."""
    w1p, b1p, w2p, b2p, w3_row, b3p = prepared_params
    B, F = x.shape
    H1p = w1p.shape[1]
    H2p = w2p.shape[1]
    assert w1p.shape[0] == F

    # Batch tile: always a multiple of 128 (lane-dense intermediates and a legal
    # (1, block_b) output block). Default: >=2 grid steps once B > 128 so both v7x
    # TensorCores get work; cap at 2048 rows (VMEM / vector-store safe on v5e).
    if block_b is None:
        if B <= 128:
            block_b = 128
        else:
            block_b = min(2048, _round_up(pl.cdiv(B, 2), 128))
    else:
        block_b = max(128, _round_up(block_b, 128))

    Bp = _round_up(B, block_b)
    grid = (Bp // block_b,)

    xin = x.astype(w1p.dtype)
    if Bp != B:
        xin = jnp.pad(xin, ((0, Bp - B), (0, 0)))

    out = pl.pallas_call(
        mlp_kernel,
        # Lane-dense output: one (1, block_b) row per grid step.
        out_shape=jax.ShapeDtypeStruct((1, Bp), jnp.float32),
        grid_spec=pltpu.PrefetchScalarGridSpec(
            num_scalar_prefetch=0,
            grid=grid,
            in_specs=[
                pl.BlockSpec((block_b, F), lambda i: (i, 0)),   # x tile (pipelined)
                pl.BlockSpec((F, H1p), lambda i: (0, 0)),       # W1 (resident)
                pl.BlockSpec((1, H1p), lambda i: (0, 0)),       # b1
                pl.BlockSpec((H1p, H2p), lambda i: (0, 0)),     # W2
                pl.BlockSpec((1, H2p), lambda i: (0, 0)),       # b2
                pl.BlockSpec((1, H2p), lambda i: (0, 0)),       # W3 as a row
                pl.BlockSpec(memory_space=pltpu.MemorySpace.SMEM),  # b3 scalar
            ],
            out_specs=pl.BlockSpec((1, block_b), lambda i: (0, i)),
        ),
        compiler_params=pltpu.CompilerParams(
            dimension_semantics=("parallel",),
            vmem_limit_bytes=32 * 1024 * 1024,   # footprint stays well under v7x's 64 MiB
        ),
    )(xin, w1p, b1p, w2p, b2p, w3_row, b3p)

    return out.reshape(Bp, 1)[:B]


def init_params(key, input_features, h1=100, h2=50, out=1):
    """Deterministic init matching torch.nn.Linear default (uniform +/- 1/sqrt(fan_in)).

    Weights are returned already transposed to (in, out)."""
    ks = jax.random.split(key, 6)

    def linear(kw, kb, fan_in, fan_out):
        bound = 1.0 / math.sqrt(fan_in)
        w = jax.random.uniform(kw, (fan_in, fan_out), jnp.float32, -bound, bound)
        b = jax.random.uniform(kb, (1, fan_out), jnp.float32, -bound, bound)
        return w, b

    w1, b1 = linear(ks[0], ks[1], input_features, h1)
    w2, b2 = linear(ks[2], ks[3], h1, h2)
    w3, b3 = linear(ks[4], ks[5], h2, out)
    return (w1, b1, w2, b2, w3, b3)


def reference_forward_matched(x, params, compute_dtype=jnp.bfloat16):
    """Pure-JAX reference using the same bf16-matmul / f32-accumulate recipe."""
    w1, b1, w2, b2, w3, b3 = params
    xc = x.astype(compute_dtype)
    h1 = jnp.dot(xc, w1.astype(compute_dtype), preferred_element_type=jnp.float32) + b1
    h1 = jnp.maximum(h1, 0.0)
    h2 = jnp.dot(h1.astype(compute_dtype), w2.astype(compute_dtype),
                 preferred_element_type=jnp.float32) + b2
    h2 = jnp.maximum(h2, 0.0)
    return jax.nn.sigmoid(jnp.dot(h2, w3) + b3)


def reference_forward_f32(x, params):
    w1, b1, w2, b2, w3, b3 = params
    h1 = jnp.maximum(x @ w1 + b1, 0.0)
    h2 = jnp.maximum(h1 @ w2 + b2, 0.0)
    return jax.nn.sigmoid(h2 @ w3 + b3)


if __name__ == "__main__":
    key = jax.random.PRNGKey(0)
    k_x1, k_x2, k_p = jax.random.split(key, 3)

    input_features = 32
    params = init_params(k_p, input_features)
    prepared = prepare_params(params)          # pad/cast hoisted out of the hot path

    # Small batch: single grid step, batch padded 20 -> 128.
    x_small = jax.random.normal(k_x1, (20, input_features), jnp.float32)
    out_small = jax.block_until_ready(torch_nn_forward(x_small, prepared))
    assert out_small.shape == (20, 1)

    # Larger batch: >=2 grid steps (pipelined / megacore path) + batch padding.
    x_big = jax.random.normal(k_x2, (300, input_features), jnp.float32)
    out_big = jax.block_until_ready(torch_nn_forward(x_big, prepared))
    assert out_big.shape == (300, 1)

    for x, out in ((x_small, out_small), (x_big, out_big)):
        ref_matched = reference_forward_matched(x, params)
        ref_f32 = reference_forward_f32(x, params)
        assert jnp.allclose(out, ref_matched, atol=1e-4, rtol=1e-4), \
            "mismatch vs bf16-matched JAX reference"
        assert jnp.allclose(out, ref_f32, atol=2e-2, rtol=2e-2), \
            "mismatch vs f32 JAX reference"

    print("KERNEL_OK")
</pallas_src>

<mosaic_0001>
module attributes {stable_mosaic.version = 11 : i64} {
  func.func @mlp_kernel(%arg0: i32, %arg1: memref<128x32xbf16, #tpu.memory_space<vmem>>, %arg2: memref<32x128xbf16, #tpu.memory_space<vmem>>, %arg3: memref<1x128xf32, #tpu.memory_space<vmem>>, %arg4: memref<128x128xbf16, #tpu.memory_space<vmem>>, %arg5: memref<1x128xf32, #tpu.memory_space<vmem>>, %arg6: memref<1x128xf32, #tpu.memory_space<vmem>>, %arg7: memref<1x1xf32, #tpu.memory_space<smem>>, %arg8: memref<1x128xf32, #tpu.memory_space<vmem>>) attributes {dimension_semantics = [#tpu.dimension_semantics<parallel>], iteration_bounds = array<i64: 1>, scalar_prefetch = 0 : i64, scratch_operands = 0 : i64, tpu.core_type = #tpu.core_type<tc>, window_params = [{transform_indices = @transform_0, window_bounds = array<i64: 128, 32>}, {pipeline_mode = #tpu.pipeline_mode<synchronous>, transform_indices = @transform_1, window_bounds = array<i64: 32, 128>}, {pipeline_mode = #tpu.pipeline_mode<synchronous>, transform_indices = @transform_2, window_bounds = array<i64: 1, 128>}, {pipeline_mode = #tpu.pipeline_mode<synchronous>, transform_indices = @transform_3, window_bounds = array<i64: 128, 128>}, {pipeline_mode = #tpu.pipeline_mode<synchronous>, transform_indices = @transform_4, window_bounds = array<i64: 1, 128>}, {pipeline_mode = #tpu.pipeline_mode<synchronous>, transform_indices = @transform_5, window_bounds = array<i64: 1, 128>}, {transform_indices = @transform_6, window_bounds = array<i64: 1, 1>}, {transform_indices = @transform_7, window_bounds = array<i64: 1, 128>}]} {
    %c0 = arith.constant 0 : index
    %c0_0 = arith.constant 0 : index
    %0 = vector.load %arg1[%c0, %c0_0] : memref<128x32xbf16, #tpu.memory_space<vmem>>, vector<128x32xbf16>
    %c0_1 = arith.constant 0 : index
    %c0_2 = arith.constant 0 : index
    %1 = vector.load %arg2[%c0_1, %c0_2] : memref<32x128xbf16, #tpu.memory_space<vmem>>, vector<32x128xbf16>
    %cst = arith.constant dense<0.000000e+00> : vector<128x128xf32>
    %2 = tpu.matmul %0, %1, %cst {dimension_numbers = #tpu.dot_dimension_numbers<[1], [0], [0], [1], [0, 0, 1, 1], [], []>} : vector<128x32xbf16>, vector<32x128xbf16>, vector<128x128xf32> -> vector<128x128xf32>
    %c0_3 = arith.constant 0 : index
    %c0_4 = arith.constant 0 : index
    %3 = vector.load %arg3[%c0_3, %c0_4] : memref<1x128xf32, #tpu.memory_space<vmem>>, vector<1x128xf32>
    %4 = vector.broadcast %3 : vector<1x128xf32> to vector<128x128xf32>
    %5 = arith.addf %2, %4 : vector<128x128xf32>
    %cst_5 = arith.constant 0.000000e+00 : f32
    %6 = vector.broadcast %cst_5 : f32 to vector<128x128xf32>
    %7 = arith.maximumf %5, %6 : vector<128x128xf32>
    %8 = arith.truncf %7 : vector<128x128xf32> to vector<128x128xbf16>
    %c0_6 = arith.constant 0 : index
    %c0_7 = arith.constant 0 : index
    %9 = vector.load %arg4[%c0_6, %c0_7] : memref<128x128xbf16, #tpu.memory_space<vmem>>, vector<128x128xbf16>
    %cst_8 = arith.constant dense<0.000000e+00> : vector<128x128xf32>
    %10 = tpu.matmul %8, %9, %cst_8 {dimension_numbers = #tpu.dot_dimension_numbers<[1], [0], [0], [1], [0, 0, 1, 1], [], []>} : vector<128x128xbf16>, vector<128x128xbf16>, vector<128x128xf32> -> vector<128x128xf32>
    %c0_9 = arith.constant 0 : index
    %c0_10 = arith.constant 0 : index
    %11 = vector.load %arg5[%c0_9, %c0_10] : memref<1x128xf32, #tpu.memory_space<vmem>>, vector<1x128xf32>
    %12 = vector.broadcast %11 : vector<1x128xf32> to vector<128x128xf32>
    %13 = arith.addf %10, %12 : vector<128x128xf32>
    %cst_11 = arith.constant 0.000000e+00 : f32
    %14 = vector.broadcast %cst_11 : f32 to vector<128x128xf32>
    %15 = arith.maximumf %13, %14 : vector<128x128xf32>
    %c0_12 = arith.constant 0 : index
    %c0_13 = arith.constant 0 : index
    %16 = vector.load %arg6[%c0_12, %c0_13] : memref<1x128xf32, #tpu.memory_space<vmem>>, vector<1x128xf32>
    %17 = tpu.transpose %15, [1, 0] : vector<128x128xf32> -> vector<128x128xf32>
    %cst_14 = arith.constant dense<0.000000e+00> : vector<1x128xf32>
    %18 = tpu.matmul %16, %17, %cst_14 {dimension_numbers = #tpu.dot_dimension_numbers<[1], [0], [0], [1], [0, 0, 1, 1], [], []>} : vector<1x128xf32>, vector<128x128xf32>, vector<1x128xf32> -> vector<1x128xf32>
    %c0_15 = arith.constant 0 : index
    %c0_16 = arith.constant 0 : index
    %19 = memref.load %arg7[%c0_15, %c0_16] : memref<1x1xf32, #tpu.memory_space<smem>>
    %20 = vector.broadcast %19 : f32 to vector<1x128xf32>
    %21 = arith.addf %18, %20 : vector<1x128xf32>
    %22 = arith.negf %21 : vector<1x128xf32>
    %23 = math.exp %22 : vector<1x128xf32>
    %cst_17 = arith.constant 1.000000e+00 : f32
    %24 = vector.broadcast %cst_17 : f32 to vector<1x128xf32>
    %25 = arith.addf %24, %23 : vector<1x128xf32>
    %26 = arith.divf %24, %25 : vector<1x128xf32>
    %c0_18 = arith.constant 0 : index
    %c0_19 = arith.constant 0 : index
    %27 = vector.load %arg8[%c0_18, %c0_19] : memref<1x128xf32, #tpu.memory_space<vmem>>, vector<1x128xf32>
    tpu.vector_store %arg8[%c0_18, %c0_19], %26 {strides = array<i32>} : memref<1x128xf32, #tpu.memory_space<vmem>>, vector<1x128xf32>,
    return
  }
  func.func @transform_0(%arg0: i32) -> (i32, i32) {
    %c0_i32 = arith.constant 0 : i32
    %c0_i32_0 = arith.constant 0 : i32
    return %arg0, %c0_i32 : i32, i32
  }
  func.func @transform_1(%arg0: i32) -> (i32, i32) {
    %c0_i32 = arith.constant 0 : i32
    %c0_i32_0 = arith.constant 0 : i32
    %c0_i32_1 = arith.constant 0 : i32
    return %c0_i32, %c0_i32_0 : i32, i32
  }
  func.func @transform_2(%arg0: i32) -> (i32, i32) {
    %c0_i32 = arith.constant 0 : i32
    %c0_i32_0 = arith.constant 0 : i32
    %c0_i32_1 = arith.constant 0 : i32
    return %c0_i32, %c0_i32_0 : i32, i32
  }
  func.func @transform_3(%arg0: i32) -> (i32, i32) {
    %c0_i32 = arith.constant 0 : i32
    %c0_i32_0 = arith.constant 0 : i32
    %c0_i32_1 = arith.constant 0 : i32
    return %c0_i32, %c0_i32_0 : i32, i32
  }
  func.func @transform_4(%arg0: i32) -> (i32, i32) {
    %c0_i32 = arith.constant 0 : i32
    %c0_i32_0 = arith.constant 0 : i32
    %c0_i32_1 = arith.constant 0 : i32
    return %c0_i32, %c0_i32_0 : i32, i32
  }
  func.func @transform_5(%arg0: i32) -> (i32, i32) {
    %c0_i32 = arith.constant 0 : i32
    %c0_i32_0 = arith.constant 0 : i32
    %c0_i32_1 = arith.constant 0 : i32
    return %c0_i32, %c0_i32_0 : i32, i32
  }
  func.func @transform_6(%arg0: i32) -> (i32, i32) {
    %c0_i32 = arith.constant 0 : i32
    %c0_i32_0 = arith.constant 0 : i32
    %c0_i32_1 = arith.constant 0 : i32
    return %c0_i32, %c0_i32_0 : i32, i32
  }
  func.func @transform_7(%arg0: i32) -> (i32, i32) {
    %c0_i32 = arith.constant 0 : i32
    %c0_i32_0 = arith.constant 0 : i32
    return %c0_i32, %arg0 : i32, i32
  }
}

</mosaic_0001>

<bundles_post_ra>
// kernel: tpu_custom_call.1
= control target key start
LH: loop header
LB: loop body
LE: loop exit
PB: predicated region body
PF: predicated region fallthrough
CT: control target
= control target key end

     0   :  { %vm108_vm0 = vcmask 261120   ;;  %s903_s0 = inlined_call_operand.vmem [shape: bf16[128,32], index: 0, kind: input, shape index: {}]   ;;  %s904_s1 = inlined_call_operand.vmem [shape: bf16[32,128], index: 1, kind: input, shape index: {}]   ;;  %s905_s2 = inlined_call_operand.vmem [shape: f32[1,128], index: 2, kind: input, shape index: {}]   ;;  %s906_s3 = inlined_call_operand.vmem [shape: bf16[128,128], index: 3, kind: input, shape index: {}]   ;;  %s907_s4 = inlined_call_operand.vmem [shape: f32[1,128], index: 4, kind: input, shape index: {}]   ;;  %s908_s5 = inlined_call_operand.vmem [shape: f32[1,128], index: 5, kind: input, shape index: {}]   ;;  %s909_s6 = inlined_call_operand.<no memory space> [shape: f32[1,1], index: 6, kind: input, shape index: {}]   ;;  %s910_s7 = inlined_call_operand.hbm [shape: f32[1,128], index: 7, kind: output, shape index: {}]  }
   0x1   :  { %v719_v0 = vld [vmem:[%s904_s1] sm:$0xff]   ;;  %v720_v1 = vld [vmem:[%s904_s1 + $0x8] sm:$0xff]   ;;  %v723_v4 = vld [vmem:[%s903_s0 + $0x10] sm:$0xff]  }
   0x2   :  { %604 = vmatprep.subr.bf16.mxu1 %v719_v0  ;;  %v721_v2 = vld [vmem:[%s903_s0] sm:$0xff]   ;;  %v722_v3 = vld [vmem:[%s903_s0 + $0x8] sm:$0xff]   ;;  %v724_v7 = vld [vmem:[%s903_s0 + $0x18] sm:$0xff]  }
   0x3   :  { %605 = vmatpush3.bf16.msra.mxu1 %v719_v0  ;;  %608 = vmatprep.mubr.msk.bf16.mxu1 %vm108_vm0, %v721_v2  ;;  %v729_v5 = vld [vmem:[%s906_s3] sm:$0xff]   ;;  %v730_v6 = vld [vmem:[%s906_s3 + $0x8] sm:$0xff]   ;;  %v731_v8 = vld [vmem:[%s906_s3 + $0x10] sm:$0xff]  }
   0x4   :  { %606 = vmatprep.subr.bf16.mxu1 %v720_v1  ;;  %v725_v9 = vld [vmem:[%s903_s0 + $0x20] sm:$0xff]  }
   0x7   :  { %607 = vmatpush3.bf16.msra.mxu1 %v720_v1 }
   0x8   :  { %624 = vmatprep.subr.bf16.mxu1 %v729_v5 }
   0xa   :  { %609 = vmatmul.mubr.msk.bf16.vlgmr.msra.gmra.mrb[0].mxu1 %vm108_vm0, %v722_v3 }
   0xb   :  { %612 = vmatprep.mubr.msk.bf16.mxu1 %vm108_vm0, %v723_v4  ;;  %625 = vmatpush3.bf16.msra.mxu1 %v729_v5 }
   0xc   :  { %626 = vmatprep.subr.bf16.mxu1 %v730_v6 }
   0xf   :  { %627 = vmatpush3.bf16.msra.mxu1 %v730_v6 }
  0x10   :  { %13 = vsyncpa [#allocation4], 0  ;;  %628 = vmatprep.subr.bf16.mxu1 %v731_v8  ;;  %v732_v10 = vld [vmem:[%s906_s3 + $0x18] sm:$0xff]   ;;  %v726_v11 = vld [vmem:[%s903_s0 + $0x28] sm:$0xff]   ;;  %vm766_vm1 = vmmov 0   ;;  %s768_s16 = smov [#allocation3]  }
  0x11   :  { %v733_v12 = vld [vmem:[%s906_s3 + $0x20] sm:$0xff]   ;;  %v727_v13 = vld [vmem:[%s903_s0 + $0x30] sm:$0xff]   ;;  %v734_v14 = vld [vmem:[%s906_s3 + $0x28] sm:$0xff]   ;;  %s524_s17 = sshll.u32 %s768_s16, 4  ;;  %s525_s17 = int_to_ptr.vmem [resolvable:$true] %s524_s17 }
  0x12   :  { %613 = vmatmul.mubr.msk.bf16.gmra.mrb[4].mxu1 %vm108_vm0, %v724_v7  ;;  %v728_v15 = vld [vmem:[%s903_s0 + $0x38] sm:$0xff]   ;;  %v735_v16 = vld [vmem:[%s906_s3 + $0x30] sm:$0xff]   ;;  %v532_v18 = vld [vmem:[%s905_s2] ss:$0 sm:$0xff]  ;;  %s741_s18 = scalar_lea.vmem %s525_s17, 16  ;;  %p746_p1 = scmp.lt.s32.totalorder %s525_s17, %s525_s17 }
  0x13   :  { %616 = vmatprep.mubr.msk.bf16.mxu1 %vm108_vm0, %v725_v9  ;;  %629 = vmatpush3.bf16.msra.mxu1 %v731_v8  ;;  %v736_v17 = vld [vmem:[%s906_s3 + $0x38] sm:$0xff]   ;;  %p742_p0 = scmp.ne.s32.totalorder %s525_s17, %s741_s18 }
  0x14   :  { %630 = vmatprep.subr.bf16.mxu1 %v732_v10 }
  0x17   :  { %631 = vmatpush3.bf16.msra.mxu1 %v732_v10 }
  0x18   :  { %632 = vmatprep.subr.bf16.mxu1 %v733_v12 }
  0x1a   :  { %617 = vmatmul.mubr.msk.bf16.gmra.mrb[8].mxu1 %vm108_vm0, %v726_v11  ;;  %v765_v11 = vmov 0.0|0.0  }
  0x1b   :  { %620 = vmatprep.mubr.msk.bf16.mxu1 %vm108_vm0, %v727_v13  ;;  %633 = vmatpush3.bf16.msra.mxu1 %v733_v12  ;;  %v767_v12 = vmov 0.0   ;;  %v551_v13 = vld [vmem:[%s907_s4] ss:$0 sm:$0xff] }
  0x1c   :  { %634 = vmatprep.subr.bf16.mxu1 %v734_v14  ;;  %691 = vmatprep.subr.bf16.mxu0 %v765_v11 }
  0x1d   :  { %688 = vmatprep.mubr.msk.f32.mxu0 %vm766_vm1, %v767_v12 }
  0x1f   :  { %635 = vmatpush3.bf16.msra.mxu1 %v734_v14 }
  0x20   :  { %636 = vmatprep.subr.bf16.mxu1 %v735_v16 }
  0x22   :  { %621 = vmatmul.mubr.msk.bf16.gmra.mrb[12].mxu1 %vm108_vm0, %v728_v15 }
  0x23   :  { %637 = vmatpush3.bf16.msra.mxu1 %v735_v16 }
  0x24   :  { %638 = vmatprep.subr.bf16.mxu1 %v736_v17 }
  0x27   :  { %639 = vmatpush3.bf16.msra.mxu1 %v736_v17 }
  0xdd   :  { %v610_v19 = vpop.f32.mrb[0].mxu1 }
  0xde   :  { %v176_v20 = vadd.f32 %v610_v19, %v532_v18  ;;  %v167_v21 = vpop.f32.mrb[1].mxu1 }
  0xdf   :  { %v168_v22 = vadd.f32 %v532_v18, %v167_v21  ;;  %v611_v23 = vpop.f32.mrb[2].mxu1 }
  0xe0   :  { %v179_v24 = vadd.f32 %v611_v23, %v532_v18  ;;  %v170_v25 = vpop.f32.mrb[3].mxu1  ;;  %v232_v27 = vmax.f32 %v176_v20, 0.0 }
  0xe1   :  { %v171_v26 = vadd.f32 %v532_v18, %v170_v25  ;;  %v230_v29 = vmax.f32 %v168_v22, 0.0 }
  0xe2   :  { %v233_v28 = vmax.f32 %v179_v24, 0.0 }
  0xe3   :  { %v231_v30 = vmax.f32 %v171_v26, 0.0 }
  0xe4   :  { %v247_v31 = vpack.c.bf16 %v233_v28, %v232_v27 }
  0xe5   :  { %v246_v32 = vpack.c.bf16 %v231_v30, %v230_v29  ;;  %v614_v33 = vpop.f32.mrb[4].mxu1 }
  0xe6   :  { %v192_v34 = vadd.f32 %v614_v33, %v532_v18  ;;  %v183_v35 = vpop.f32.mrb[5].mxu1 }
  0xe7   :  { %v184_v36 = vadd.f32 %v532_v18, %v183_v35  ;;  %640 = vmatprep.mubr.bf16.mxu1 %v246_v32  ;;  %v615_v37 = vpop.f32.mrb[6].mxu1 }
  0xe8   :  { %v236_v38 = vmax.f32 %v192_v34, 0.0  ;;  %v195_v39 = vadd.f32 %v615_v37, %v532_v18  ;;  %641 = vmatmul.mubr.bf16.vlgmr.msra.gmra.mrb[16].mxu1 %v247_v31  ;;  %v186_v40 = vpop.f32.mrb[7].mxu1 }
  0xe9   :  { %v234_v41 = vmax.f32 %v184_v36, 0.0  ;;  %v187_v42 = vadd.f32 %v532_v18, %v186_v40 }
  0xea   :  { %v237_v43 = vmax.f32 %v195_v39, 0.0 }
  0xeb   :  { %v235_v44 = vmax.f32 %v187_v42, 0.0 }
  0xec   :  { %v249_v45 = vpack.c.bf16 %v237_v43, %v236_v38 }
  0xed   :  { %v248_v46 = vpack.c.bf16 %v235_v44, %v234_v41  ;;  %v618_v47 = vpop.f32.mrb[8].mxu1 }
  0xee   :  { %v208_v48 = vadd.f32 %v618_v47, %v532_v18  ;;  %v199_v49 = vpop.f32.mrb[9].mxu1 }
  0xef   :  { %644 = vmatprep.mubr.bf16.mxu1 %v248_v46  ;;  %v200_v50 = vadd.f32 %v532_v18, %v199_v49  ;;  %v619_v51 = vpop.f32.mrb[10].mxu1 }
  0xf0   :  { %645 = vmatmul.mubr.bf16.gmra.mrb[20].mxu1 %v249_v45  ;;  %v240_v52 = vmax.f32 %v208_v48, 0.0  ;;  %v211_v53 = vadd.f32 %v619_v51, %v532_v18  ;;  %v202_v54 = vpop.f32.mrb[11].mxu1 }
  0xf1   :  { %v238_v55 = vmax.f32 %v200_v50, 0.0  ;;  %v203_v56 = vadd.f32 %v532_v18, %v202_v54 }
  0xf2   :  { %v241_v57 = vmax.f32 %v211_v53, 0.0 }
  0xf3   :  { %v239_v58 = vmax.f32 %v203_v56, 0.0 }
  0xf4   :  { %v251_v59 = vpack.c.bf16 %v241_v57, %v240_v52 }
  0xf5   :  { %v250_v60 = vpack.c.bf16 %v239_v58, %v238_v55  ;;  %v622_v61 = vpop.f32.mrb[12].mxu1 }
  0xf6   :  { %v224_v62 = vadd.f32 %v622_v61, %v532_v18  ;;  %v215_v63 = vpop.f32.mrb[13].mxu1 }
  0xf7   :  { %648 = vmatprep.mubr.bf16.mxu1 %v250_v60  ;;  %v216_v0 = vadd.f32 %v532_v18, %v215_v63  ;;  %v623_v1 = vpop.f32.mrb[14].mxu1 }
  0xf8   :  { %649 = vmatmul.mubr.bf16.gmra.mrb[24].mxu1 %v251_v59  ;;  %v244_v2 = vmax.f32 %v224_v62, 0.0  ;;  %v227_v3 = vadd.f32 %v623_v1, %v532_v18  ;;  %v218_v4 = vpop.f32.mrb[15].mxu1 }
  0xf9   :  { %v242_v5 = vmax.f32 %v216_v0, 0.0  ;;  %v219_v6 = vadd.f32 %v532_v18, %v218_v4 }
  0xfa   :  { %v245_v7 = vmax.f32 %v227_v3, 0.0 }
  0xfb   :  { %v243_v8 = vmax.f32 %v219_v6, 0.0  ;;  %v438_v6 = vld [vmem:[%s908_s5] sm:$0x1]  ;;  %s745_s5 = scalar_lea.vmem %s525_s17, 32 }
  0xfc   :  { %v253_v9 = vpack.c.bf16 %v245_v7, %v244_v2  ;;  %v440_v7 = vstv %s909_s6  ;;  %p747_p2 = scmp.lt.s32.totalorder %s745_s5, %s741_s18 }
  0xfd   :  { %v252_v10 = vpack.c.bf16 %v243_v8, %v242_v5 }
  0xfe   :  { %p748_p3 = por %p747_p2, %p746_p1 }
  0xff   :  { %652 = vmatprep.mubr.bf16.mxu1 %v252_v10 }
 0x100   :  { %653 = vmatmul.mubr.bf16.gmra.mrb[28].mxu1 %v253_v9  ;;  %p749_p4 = pnand %p748_p3, %p742_p0 }
 0x1bb   :  { %v642_v14 = vpop.f32.mrb[16].mxu1 }
 0x1bc   :  { %v368_v15 = vadd.f32 %v642_v14, %v551_v13  ;;  %v359_v16 = vpop.f32.mrb[17].mxu1 }
 0x1bd   :  { %v360_v17 = vadd.f32 %v551_v13, %v359_v16  ;;  %v643_v18 = vpop.f32.mrb[18].mxu1 }
 0x1be   :  { %v371_v19 = vadd.f32 %v643_v18, %v551_v13  ;;  %v362_v20 = vpop.f32.mrb[19].mxu1  ;;  %v424_v22 = vmax.f32 %v368_v15, 0.0 }
 0x1bf   :  { %v363_v21 = vadd.f32 %v551_v13, %v362_v20  ;;  %v422_v24 = vmax.f32 %v360_v17, 0.0 }
 0x1c0   :  { %v425_v23 = vmax.f32 %v371_v19, 0.0 }
 0x1c1   :  { %v423_v25 = vmax.f32 %v363_v21, 0.0 }
 0x1c2   :  { %v695_v26 = vpack.c.bf16 %v425_v23, %v424_v22 }
 0x1c3   :  { %v646_v27 = vpop.f32.mrb[20].mxu1  ;;  %v692_v28 = vpack.c.bf16 %v423_v25, %v422_v24 }
 0x1c4   :  { %v384_v29 = vadd.f32 %v646_v27, %v551_v13  ;;  %v375_v30 = vpop.f32.mrb[21].mxu1 }
 0x1c5   :  { %v376_v31 = vadd.f32 %v551_v13, %v375_v30  ;;  %693 = vmatpush3.bf16.xpose.msra.mxu0 %v692_v28  ;;  %v647_v32 = vpop.f32.mrb[22].mxu1 }
 0x1c6   :  { %v428_v33 = vmax.f32 %v384_v29, 0.0  ;;  %v387_v34 = vadd.f32 %v647_v32, %v551_v13  ;;  %v378_v35 = vpop.f32.mrb[23].mxu1  ;;  %694 = vmatprep.subr.bf16.mxu0 %v765_v11 }
 0x1c7   :  { %v426_v36 = vmax.f32 %v376_v31, 0.0  ;;  %v379_v37 = vadd.f32 %v551_v13, %v378_v35 }
 0x1c8   :  { %v429_v38 = vmax.f32 %v387_v34, 0.0 }
 0x1c9   :  { %v427_v39 = vmax.f32 %v379_v37, 0.0 }
 0x1ca   :  { %v701_v40 = vpack.c.bf16 %v429_v38, %v428_v33 }
 0x1cb   :  { %v698_v41 = vpack.c.bf16 %v427_v39, %v426_v36  ;;  %v650_v42 = vpop.f32.mrb[24].mxu1 }
 0x1cc   :  { %v400_v43 = vadd.f32 %v650_v42, %v551_v13  ;;  %v391_v44 = vpop.f32.mrb[25].mxu1 }
 0x1cd   :  { %696 = vmatpush3.bf16.xpose.msra.mxu0 %v695_v26  ;;  %v392_v45 = vadd.f32 %v551_v13, %v391_v44  ;;  %v651_v46 = vpop.f32.mrb[26].mxu1 }
 0x1ce   :  { %v432_v47 = vmax.f32 %v400_v43, 0.0  ;;  %697 = vmatprep.subr.bf16.mxu0 %v765_v11  ;;  %v403_v48 = vadd.f32 %v651_v46, %v551_v13  ;;  %v394_v49 = vpop.f32.mrb[27].mxu1 }
 0x1cf   :  { %v430_v50 = vmax.f32 %v392_v45, 0.0  ;;  %v395_v51 = vadd.f32 %v551_v13, %v394_v49 }
 0x1d0   :  { %v433_v52 = vmax.f32 %v403_v48, 0.0 }
 0x1d1   :  { %v431_v53 = vmax.f32 %v395_v51, 0.0 }
 0x1d2   :  { %v707_v54 = vpack.c.bf16 %v433_v52, %v432_v47 }
 0x1d3   :  { %v704_v55 = vpack.c.bf16 %v431_v53, %v430_v50  ;;  %v654_v56 = vpop.f32.mrb[28].mxu1 }
 0x1d4   :  { %v416_v57 = vadd.f32 %v654_v56, %v551_v13  ;;  %v407_v58 = vpop.f32.mrb[29].mxu1 }
 0x1d5   :  { %699 = vmatpush3.bf16.xpose.msra.mxu0 %v698_v41  ;;  %v408_v59 = vadd.f32 %v551_v13, %v407_v58  ;;  %v655_v60 = vpop.f32.mrb[30].mxu1 }
 0x1d6   :  { %700 = vmatprep.subr.bf16.mxu0 %v765_v11  ;;  %v436_v61 = vmax.f32 %v416_v57, 0.0  ;;  %v419_v62 = vadd.f32 %v655_v60, %v551_v13  ;;  %v410_v63 = vpop.f32.mrb[31].mxu1 }
 0x1d7   :  { %v434_v0 = vmax.f32 %v408_v59, 0.0  ;;  %v411_v1 = vadd.f32 %v551_v13, %v410_v63 }
 0x1d8   :  { %v437_v2 = vmax.f32 %v419_v62, 0.0 }
 0x1d9   :  { %v435_v3 = vmax.f32 %v411_v1, 0.0 }
 0x1da   :  { %v713_v4 = vpack.c.bf16 %v437_v2, %v436_v61 }
 0x1db   :  { %v710_v5 = vpack.c.bf16 %v435_v3, %v434_v0 }
 0x1dd   :  { %702 = vmatpush3.bf16.xpose.msra.mxu0 %v701_v40 }
 0x1de   :  { %703 = vmatprep.subr.bf16.mxu0 %v765_v11 }
 0x1e5   :  { %705 = vmatpush3.bf16.xpose.msra.mxu0 %v704_v55 }
 0x1e6   :  { %706 = vmatprep.subr.bf16.mxu0 %v765_v11 }
 0x1ed   :  { %708 = vmatpush3.bf16.xpose.msra.mxu0 %v707_v54 }
 0x1ee   :  { %709 = vmatprep.subr.bf16.mxu0 %v765_v11 }
 0x1f5   :  { %711 = vmatpush3.bf16.xpose.msra.mxu0 %v710_v5 }
 0x1f6   :  { %712 = vmatprep.subr.bf16.mxu0 %v765_v11 }
 0x1fd   :  { %714 = vmatpush3.bf16.xpose.msra.mxu0 %v713_v4 }
 0x204   :  { %689 = vmatmul.mubr.f32.vlgmr.msra.gmra.mrb[0].mxu0 %v438_v6 }
 0x2d7   :  { %v507_v8 = vpop.f32.mrb[0].mxu0 }
 0x2d8   :  { %v508_v9 = vadd.f32 %v507_v8, %v440_v7  ;;  %v690_v10 = vpop.f32.mrb[1].mxu0 }
 0x2da   :  { %v560_v12 = vmul.f32 -1.442695, %v508_v9 }
 0x2dc   :  { %737 = vpow2.f32 %v560_v12 }
 0x2e6   :  { %v738_v13 = vpop.eup %737 }
 0x2e7   :  { %v514_v14 = vadd.f32 1.0, %v738_v13 }
 0x2e9   :  { %739 = vrcp.f32 %v514_v14 }
 0x2f3   :  { %v740_v11 = vpop.eup %739 }
 0x2f4   :  { %517 = vst [vmem:[#allocation3] sm:$0x1] %v740_v11 }
 0x2f5   :  { %752 = shalt.err (!%p749_p4)
}
 0x2f6   :  { %s753_s20 = scalar_lea.hbm %s910_s7, 16 }
 0x2f7   :  { %p754_p5 = scmp.ne.s32.totalorder %s910_s7, %s753_s20  ;;  %p757_p6 = scmp.lt.u32.totalorder %s753_s20, %s910_s7 }
 0x2f9   :  { %p759_p7 = pnand %p757_p6, %p754_p5 }
 0x2fb   :  { %762 = shalt.err (!%p759_p7)
}
 0x2fc   :  { %527 = dma.vmem_to_hbm [thread:$0]  %s525_s17, 16, %s910_s7, [#allocation4]  }
 0x2fd   :  { %763 = dma.done.wait [#allocation4], 16  }
 0x2fe   :  { %764 = vsyncadd [#allocation4], 4294967280 }
 0x2ff   :  { %531 = vsyncpa [#allocation4], 1 }

</bundles_post_ra>
